<compile_context>
chip_gen: v7x
topology: tpu7x:2x2x1
jax: 0.10.0
libtpu: 0.0.40
codegen_flags: <defaults>
</compile_context>

<pallas_src>
import functools
import math

import jax
import jax.numpy as jnp
from jax.experimental import pallas as pl
from jax.experimental.pallas import tpu as pltpu


HIDDEN = 50          # logical hidden width (matches the PyTorch module)
_LANE = 128          # TPU lane width
_SUB = 8             # TPU sublane width


def _round_up(x, m):
    return (x + m - 1) // m * m


# ---------------------------------------------------------------------------
# Kernel
# ---------------------------------------------------------------------------
def _policy_kernel(x_ref,
                   w1_ref, w2_ref, w3_ref, w4_ref,
                   b_ref,
                   out_ref,
                   *, discrete: bool):
    h_pad = w2_ref.shape[1]
    a_pad = w4_ref.shape[1]

    # Packed biases (f32): rows 0..2 -> hidden biases, row 3 -> output bias.
    # For the discrete head, row 3's padded lanes already carry -1e30 so the
    # softmax mask is free.  Static slices -> zero runtime cost.
    b1 = b_ref[pl.ds(0, 1), :h_pad]
    b2 = b_ref[pl.ds(1, 1), :h_pad]
    b3 = b_ref[pl.ds(2, 1), :h_pad]
    b4 = b_ref[pl.ds(3, 1), :a_pad]

    # bf16 MXU operands, f32 accumulation, f32 bias + tanh.
    x = x_ref[...].astype(jnp.bfloat16)
    h = jnp.tanh(jnp.dot(x, w1_ref[...], preferred_element_type=jnp.float32) + b1)
    h = jnp.tanh(jnp.dot(h.astype(jnp.bfloat16), w2_ref[...],
                         preferred_element_type=jnp.float32) + b2)
    h = jnp.tanh(jnp.dot(h.astype(jnp.bfloat16), w3_ref[...],
                         preferred_element_type=jnp.float32) + b3)
    logits = jnp.dot(h.astype(jnp.bfloat16), w4_ref[...],
                     preferred_element_type=jnp.float32) + b4

    if discrete:
        # Padded action lanes carry a -1e30 bias -> exp(...) == 0 exactly, so
        # the softmax only "sees" the real action lanes.
        m = jnp.max(logits, axis=-1, keepdims=True)
        e = jnp.exp(logits - m)
        s = jnp.sum(e, axis=-1, keepdims=True)
        inv = pl.reciprocal(s, approx=True)
        inv = inv * (2.0 - s * inv)                   # one Newton step -> f32 accurate
        out_ref[...] = (e * inv).astype(out_ref.dtype)
    else:
        # mean of the MultivariateNormal (padded lanes are exactly 0)
        out_ref[...] = logits.astype(out_ref.dtype)


# ---------------------------------------------------------------------------
# Wrapper
# ---------------------------------------------------------------------------
def policy_forward(params, states, *, discrete: bool, action_dim: int,
                   tile_m: int = 2048):
    """Runs the PolicyNetwork MLP head inside a single Pallas kernel.

    Returns:
      discrete=True : probs [B, action_dim]              (Categorical parameters)
      discrete=False: (mean [B, action_dim], cov [A, A]) (MultivariateNormal params)
    """
    B, state_dim = states.shape
    h_pad = params["w2"].shape[0]
    a_pad = params["w4"].shape[1]
    b_lanes = params["b_pack"].shape[1]

    # Batch tile: as large as possible to amortize per-step overhead, but
    # capped at ceil(B/2) (rounded to sublanes) so the parallel grid axis has
    # >= 2 steps for v7x's two TensorCores whenever B is large.  No host-side
    # padding: Pallas masks the partial last block.
    tm = max(_SUB, min(tile_m, _round_up(pl.cdiv(B, 2), _SUB)))
    grid = (pl.cdiv(B, tm),)

    flops = 2 * B * (state_dim * h_pad + 2 * h_pad * h_pad + h_pad * a_pad)
    transcendentals = B * (3 * h_pad + (a_pad if discrete else 0))
    weight_bytes = sum(int(params[k].size) * params[k].dtype.itemsize
                       for k in ("w1", "w2", "w3", "w4", "b_pack"))
    bytes_accessed = int(states.size) * 4 + weight_bytes + B * a_pad * 4

    kernel = functools.partial(_policy_kernel, discrete=discrete)

    out = pl.pallas_call(
        kernel,
        out_shape=jax.ShapeDtypeStruct((B, a_pad), jnp.float32),
        grid=grid,
        in_specs=[
            # streamed activations: one batch tile per grid step
            pl.BlockSpec((tm, state_dim), lambda i: (i, 0)),
            # weights/biases: constant index_map -> fetched once, VMEM-resident
            pl.BlockSpec((state_dim, h_pad), lambda i: (0, 0)),
            pl.BlockSpec((h_pad, h_pad), lambda i: (0, 0)),
            pl.BlockSpec((h_pad, h_pad), lambda i: (0, 0)),
            pl.BlockSpec((h_pad, a_pad), lambda i: (0, 0)),
            pl.BlockSpec((4, b_lanes), lambda i: (0, 0)),
        ],
        out_specs=pl.BlockSpec((tm, a_pad), lambda i: (i, 0)),
        compiler_params=pltpu.CompilerParams(
            dimension_semantics=("parallel",)),
        cost_estimate=pl.CostEstimate(flops=flops,
                                      transcendentals=transcendentals,
                                      bytes_accessed=bytes_accessed),
    )(states, params["w1"], params["w2"], params["w3"], params["w4"],
      params["b_pack"])

    # Lane slice only (action_dim < 128): cheaper than a masked/strided store
    # per the review; ideally fused into the consumer.
    out = out[:, :action_dim]

    if discrete:
        return out
    # Continuous head: std = exp(log_std); cov = eye(action_dim) * std**2
    # TODO(synk): torch.distributions object construction has no Pallas
    # equivalent; we return the distribution parameters (mean, cov) instead.
    std = jnp.exp(params["log_std"])
    cov = jnp.eye(action_dim, dtype=jnp.float32) * (std ** 2)
    return out, cov


# ---------------------------------------------------------------------------
# Parameter init (PyTorch Linear default U[-1/sqrt(fan_in), 1/sqrt(fan_in)]),
# zero-padded to (8,128)-aligned shapes and stored bf16 for the MXU.  Zero
# padding keeps the math identical (tanh(0)=0, zero weight rows/cols add
# nothing); for the discrete head the padded output-bias lanes are -1e30 so
# softmax padding masking is free inside the kernel.
# ---------------------------------------------------------------------------
def init_params(key, state_dim, action_dim, discrete):
    h_pad = _round_up(HIDDEN, _LANE)
    a_pad = _round_up(action_dim, _LANE)
    b_lanes = max(h_pad, a_pad)

    #        (fan_in, fan_out, padded_in, padded_out)
    dims = [(state_dim, HIDDEN, state_dim, h_pad),
            (HIDDEN, HIDDEN, h_pad, h_pad),
            (HIDDEN, HIDDEN, h_pad, h_pad),
            (HIDDEN, action_dim, h_pad, a_pad)]

    params = {}
    b_pack = jnp.zeros((4, b_lanes), dtype=jnp.float32)
    if discrete:
        # Baked softmax mask: padded action lanes -> large finite negative.
        lane_mask = jnp.where(jnp.arange(b_lanes) < action_dim, 0.0, -1e30)
        b_pack = b_pack.at[3, :].set(lane_mask.astype(jnp.float32))

    keys = jax.random.split(key, 2 * len(dims))
    for idx, (fi, fo, pi, po) in enumerate(dims):
        bound = 1.0 / math.sqrt(fi)
        w = jax.random.uniform(keys[2 * idx], (fi, fo),
                               minval=-bound, maxval=bound, dtype=jnp.float32)
        b = jax.random.uniform(keys[2 * idx + 1], (fo,),
                               minval=-bound, maxval=bound, dtype=jnp.float32)
        w_pad = jnp.zeros((pi, po), jnp.float32).at[:fi, :fo].set(w)
        params[f"w{idx + 1}"] = w_pad.astype(jnp.bfloat16)
        b_pack = b_pack.at[idx, :fo].set(b)
    params["b_pack"] = b_pack
    if not discrete:
        params["log_std"] = jnp.zeros((action_dim,), dtype=jnp.float32)
    return params


if __name__ == "__main__":
    B, STATE_DIM, ACTION_DIM = 8, 16, 8

    key = jax.random.PRNGKey(0)
    k_states, k_params = jax.random.split(key)
    states = jax.random.normal(k_states, (B, STATE_DIM), dtype=jnp.float32)

    # Discrete policy: kernel outputs Categorical probabilities.
    params_d = init_params(k_params, STATE_DIM, ACTION_DIM, discrete=True)
    probs = policy_forward(params_d, states, discrete=True, action_dim=ACTION_DIM)
    probs = jax.block_until_ready(probs)
    assert probs.shape == (B, ACTION_DIM)
    assert bool(jnp.all(jnp.isfinite(probs)))
    assert bool(jnp.all(probs >= 0.0))
    assert bool(jnp.allclose(jnp.sum(probs, axis=-1), 1.0, atol=1e-5))

    # Continuous policy: kernel outputs the mean; cov built from log_std in JAX.
    params_c = init_params(k_params, STATE_DIM, ACTION_DIM, discrete=False)
    mean, cov = policy_forward(params_c, states, discrete=False, action_dim=ACTION_DIM)
    mean = jax.block_until_ready(mean)
    cov = jax.block_until_ready(cov)
    assert mean.shape == (B, ACTION_DIM)
    assert cov.shape == (ACTION_DIM, ACTION_DIM)
    assert bool(jnp.all(jnp.isfinite(mean)))

    print("KERNEL_OK")
</pallas_src>

<mosaic_0001>
module attributes {stable_mosaic.version = 11 : i64} {
  func.func @_policy_kernel(%arg0: i32, %arg1: memref<8x16xf32, #tpu.memory_space<vmem>>, %arg2: memref<16x128xbf16, #tpu.memory_space<vmem>>, %arg3: memref<128x128xbf16, #tpu.memory_space<vmem>>, %arg4: memref<128x128xbf16, #tpu.memory_space<vmem>>, %arg5: memref<128x128xbf16, #tpu.memory_space<vmem>>, %arg6: memref<4x128xf32, #tpu.memory_space<vmem>>, %arg7: memref<8x128xf32, #tpu.memory_space<vmem>>) attributes {dimension_semantics = [#tpu.dimension_semantics<parallel>], iteration_bounds = array<i64: 1>, scalar_prefetch = 0 : i64, scratch_operands = 0 : i64, tpu.core_type = #tpu.core_type<tc>, window_params = [{transform_indices = @transform_0, window_bounds = array<i64: 8, 16>}, {pipeline_mode = #tpu.pipeline_mode<synchronous>, transform_indices = @transform_1, window_bounds = array<i64: 16, 128>}, {pipeline_mode = #tpu.pipeline_mode<synchronous>, transform_indices = @transform_2, window_bounds = array<i64: 128, 128>}, {pipeline_mode = #tpu.pipeline_mode<synchronous>, transform_indices = @transform_3, window_bounds = array<i64: 128, 128>}, {pipeline_mode = #tpu.pipeline_mode<synchronous>, transform_indices = @transform_4, window_bounds = array<i64: 128, 128>}, {pipeline_mode = #tpu.pipeline_mode<synchronous>, transform_indices = @transform_5, window_bounds = array<i64: 4, 128>}, {transform_indices = @transform_6, window_bounds = array<i64: 8, 128>}]} {
    %c0 = arith.constant 0 : index
    %c0_0 = arith.constant 0 : index
    %0 = vector.load %arg6[%c0, %c0_0] : memref<4x128xf32, #tpu.memory_space<vmem>>, vector<1x128xf32>
    %c1 = arith.constant 1 : index
    %c0_1 = arith.constant 0 : index
    %1 = vector.load %arg6[%c1, %c0_1] : memref<4x128xf32, #tpu.memory_space<vmem>>, vector<1x128xf32>
    %c2 = arith.constant 2 : index
    %c0_2 = arith.constant 0 : index
    %2 = vector.load %arg6[%c2, %c0_2] : memref<4x128xf32, #tpu.memory_space<vmem>>, vector<1x128xf32>
    %c3 = arith.constant 3 : index
    %c0_3 = arith.constant 0 : index
    %3 = vector.load %arg6[%c3, %c0_3] : memref<4x128xf32, #tpu.memory_space<vmem>>, vector<1x128xf32>
    %c0_4 = arith.constant 0 : index
    %c0_5 = arith.constant 0 : index
    %4 = vector.load %arg1[%c0_4, %c0_5] : memref<8x16xf32, #tpu.memory_space<vmem>>, vector<8x16xf32>
    %5 = arith.truncf %4 : vector<8x16xf32> to vector<8x16xbf16>
    %c0_6 = arith.constant 0 : index
    %c0_7 = arith.constant 0 : index
    %6 = vector.load %arg2[%c0_6, %c0_7] : memref<16x128xbf16, #tpu.memory_space<vmem>>, vector<16x128xbf16>
    %cst = arith.constant dense<0.000000e+00> : vector<8x128xf32>
    %7 = tpu.matmul %5, %6, %cst {dimension_numbers = #tpu.dot_dimension_numbers<[1], [0], [0], [1], [0, 0, 1, 1], [], []>} : vector<8x16xbf16>, vector<16x128xbf16>, vector<8x128xf32> -> vector<8x128xf32>
    %8 = vector.broadcast %0 : vector<1x128xf32> to vector<8x128xf32>
    %9 = arith.addf %7, %8 : vector<8x128xf32>
    %10 = math.tanh %9 : vector<8x128xf32>
    %11 = arith.truncf %10 : vector<8x128xf32> to vector<8x128xbf16>
    %c0_8 = arith.constant 0 : index
    %c0_9 = arith.constant 0 : index
    %12 = vector.load %arg3[%c0_8, %c0_9] : memref<128x128xbf16, #tpu.memory_space<vmem>>, vector<128x128xbf16>
    %cst_10 = arith.constant dense<0.000000e+00> : vector<8x128xf32>
    %13 = tpu.matmul %11, %12, %cst_10 {dimension_numbers = #tpu.dot_dimension_numbers<[1], [0], [0], [1], [0, 0, 1, 1], [], []>} : vector<8x128xbf16>, vector<128x128xbf16>, vector<8x128xf32> -> vector<8x128xf32>
    %14 = vector.broadcast %1 : vector<1x128xf32> to vector<8x128xf32>
    %15 = arith.addf %13, %14 : vector<8x128xf32>
    %16 = math.tanh %15 : vector<8x128xf32>
    %17 = arith.truncf %16 : vector<8x128xf32> to vector<8x128xbf16>
    %c0_11 = arith.constant 0 : index
    %c0_12 = arith.constant 0 : index
    %18 = vector.load %arg4[%c0_11, %c0_12] : memref<128x128xbf16, #tpu.memory_space<vmem>>, vector<128x128xbf16>
    %cst_13 = arith.constant dense<0.000000e+00> : vector<8x128xf32>
    %19 = tpu.matmul %17, %18, %cst_13 {dimension_numbers = #tpu.dot_dimension_numbers<[1], [0], [0], [1], [0, 0, 1, 1], [], []>} : vector<8x128xbf16>, vector<128x128xbf16>, vector<8x128xf32> -> vector<8x128xf32>
    %20 = vector.broadcast %2 : vector<1x128xf32> to vector<8x128xf32>
    %21 = arith.addf %19, %20 : vector<8x128xf32>
    %22 = math.tanh %21 : vector<8x128xf32>
    %23 = arith.truncf %22 : vector<8x128xf32> to vector<8x128xbf16>
    %c0_14 = arith.constant 0 : index
    %c0_15 = arith.constant 0 : index
    %24 = vector.load %arg5[%c0_14, %c0_15] : memref<128x128xbf16, #tpu.memory_space<vmem>>, vector<128x128xbf16>
    %cst_16 = arith.constant dense<0.000000e+00> : vector<8x128xf32>
    %25 = tpu.matmul %23, %24, %cst_16 {dimension_numbers = #tpu.dot_dimension_numbers<[1], [0], [0], [1], [0, 0, 1, 1], [], []>} : vector<8x128xbf16>, vector<128x128xbf16>, vector<8x128xf32> -> vector<8x128xf32>
    %26 = vector.broadcast %3 : vector<1x128xf32> to vector<8x128xf32>
    %27 = arith.addf %25, %26 : vector<8x128xf32>
    %cst_17 = arith.constant dense<0xFF800000> : vector<8xf32>
    %28 = vector.multi_reduction <maximumf>, %27, %cst_17 [1] : vector<8x128xf32> to vector<8xf32>
    %29 = vector.shape_cast %28 : vector<8xf32> to vector<8x1xf32>
    %30 = vector.broadcast %29 : vector<8x1xf32> to vector<8x128xf32>
    %31 = arith.subf %27, %30 : vector<8x128xf32>
    %32 = math.exp %31 : vector<8x128xf32>
    %cst_18 = arith.constant dense<0.000000e+00> : vector<8xf32>
    %33 = vector.multi_reduction <add>, %32, %cst_18 [1] : vector<8x128xf32> to vector<8xf32>
    %34 = vector.shape_cast %33 : vector<8xf32> to vector<8x1xf32>
    %35 = tpu.reciprocal %34 {approx = true} : vector<8x1xf32> -> vector<8x1xf32>
    %36 = arith.mulf %34, %35 : vector<8x1xf32>
    %cst_19 = arith.constant 2.000000e+00 : f32
    %37 = vector.broadcast %cst_19 : f32 to vector<8x1xf32>
    %38 = arith.subf %37, %36 : vector<8x1xf32>
    %39 = arith.mulf %35, %38 : vector<8x1xf32>
    %40 = vector.broadcast %39 : vector<8x1xf32> to vector<8x128xf32>
    %41 = arith.mulf %32, %40 : vector<8x128xf32>
    %c0_20 = arith.constant 0 : index
    %c0_21 = arith.constant 0 : index
    %42 = vector.load %arg7[%c0_20, %c0_21] : memref<8x128xf32, #tpu.memory_space<vmem>>, vector<8x128xf32>
    tpu.vector_store %arg7[%c0_20, %c0_21], %41 {strides = array<i32>} : memref<8x128xf32, #tpu.memory_space<vmem>>, vector<8x128xf32>,
    return
  }
  func.func @transform_0(%arg0: i32) -> (i32, i32) {
    %c0_i32 = arith.constant 0 : i32
    %c0_i32_0 = arith.constant 0 : i32
    return %arg0, %c0_i32 : i32, i32
  }
  func.func @transform_1(%arg0: i32) -> (i32, i32) {
    %c0_i32 = arith.constant 0 : i32
    %c0_i32_0 = arith.constant 0 : i32
    %c0_i32_1 = arith.constant 0 : i32
    return %c0_i32, %c0_i32_0 : i32, i32
  }
  func.func @transform_2(%arg0: i32) -> (i32, i32) {
    %c0_i32 = arith.constant 0 : i32
    %c0_i32_0 = arith.constant 0 : i32
    %c0_i32_1 = arith.constant 0 : i32
    return %c0_i32, %c0_i32_0 : i32, i32
  }
  func.func @transform_3(%arg0: i32) -> (i32, i32) {
    %c0_i32 = arith.constant 0 : i32
    %c0_i32_0 = arith.constant 0 : i32
    %c0_i32_1 = arith.constant 0 : i32
    return %c0_i32, %c0_i32_0 : i32, i32
  }
  func.func @transform_4(%arg0: i32) -> (i32, i32) {
    %c0_i32 = arith.constant 0 : i32
    %c0_i32_0 = arith.constant 0 : i32
    %c0_i32_1 = arith.constant 0 : i32
    return %c0_i32, %c0_i32_0 : i32, i32
  }
  func.func @transform_5(%arg0: i32) -> (i32, i32) {
    %c0_i32 = arith.constant 0 : i32
    %c0_i32_0 = arith.constant 0 : i32
    %c0_i32_1 = arith.constant 0 : i32
    return %c0_i32, %c0_i32_0 : i32, i32
  }
  func.func @transform_6(%arg0: i32) -> (i32, i32) {
    %c0_i32 = arith.constant 0 : i32
    %c0_i32_0 = arith.constant 0 : i32
    return %arg0, %c0_i32 : i32, i32
  }
}

</mosaic_0001>

<bundles_post_ra>
// kernel: tpu_custom_call.1
= control target key start
LH: loop header
LB: loop body
LE: loop exit
PB: predicated region body
PF: predicated region fallthrough
CT: control target
= control target key end

     0   :  { %11 = vsyncpa [#allocation3], 0  ;;  %s997_s0 = inlined_call_operand.hbm [shape: f32[8,16], index: 0, kind: input, shape index: {}]   ;;  %s998_s1 = inlined_call_operand.hbm [shape: bf16[16,128], index: 1, kind: input, shape index: {}]   ;;  %s999_s2 = inlined_call_operand.hbm [shape: bf16[128,128], index: 2, kind: input, shape index: {}]   ;;  %s1000_s3 = inlined_call_operand.hbm [shape: bf16[128,128], index: 3, kind: input, shape index: {}]   ;;  %s1001_s4 = inlined_call_operand.hbm [shape: bf16[128,128], index: 4, kind: input, shape index: {}]   ;;  %s1002_s5 = inlined_call_operand.vmem [shape: f32[4,128], index: 5, kind: input, shape index: {}]   ;;  %s1003_s6 = inlined_call_operand.hbm [shape: f32[8,128], index: 6, kind: output, shape index: {}]  }
   0x1   :  { %12 = vsyncpa [#allocation6], 0 }
   0x2   :  { %13 = vsyncpa [#allocation9], 0 }
   0x3   :  { %14 = vsyncpa [#allocation4], 0  ;;  %s823_s21 = smov [#allocation5]   ;;  %s683_s25 = scalar_lea.hbm %s998_s1, 128 }
   0x4   :  { %s30_s22 = sshll.u32 %s823_s21, 4  ;;  %p684_p0 = scmp.ne.s32.totalorder %s998_s1, %s683_s25  ;;  %s31_s22 = int_to_ptr.vmem [resolvable:$true] %s30_s22 }
   0x5   :  { %p687_p1 = scmp.lt.u32.totalorder %s683_s25, %s998_s1 }
   0x7   :  { %p689_p2 = pnand %p687_p1, %p684_p0 }
   0x9   :  { %692 = shalt.err (!%p689_p2)
}
   0xa   :  { %s693_s30 = scalar_lea.vmem %s31_s22, 128  ;;  %p698_p4 = scmp.lt.s32.totalorder %s31_s22, %s31_s22 }
   0xb   :  { %p694_p3 = scmp.ne.s32.totalorder %s31_s22, %s693_s30  ;;  %p699_p5 = scmp.lt.s32.totalorder %s693_s30, %s693_s30 }
   0xd   :  { %p700_p6 = por %p699_p5, %p698_p4 }
   0xf   :  { %p701_p7 = pnand %p700_p6, %p694_p3 }
  0x11   :  { %704 = shalt.err (!%p701_p7)
}
  0x12   :  { %s824_s7 = smov 64   ;;  %s825_s8 = smov 4  }
  0x13   :  { %36 = dma.hbm_to_vmem [thread:$0]  %s998_s1, 128, %s31_s22, [#allocation6], %s824_s7, %s824_s7, %s825_s8  }
  0x14   :  { %s826_s11 = smov [#allocation8]   ;;  %s827_s13 = smov [#allocation2]  }
  0x15   :  { %s54_s12 = sshll.u32 %s826_s11, 4  ;;  %s21_s14 = sshll.u32 %s827_s13, 4  ;;  %s55_s12 = int_to_ptr.vmem [resolvable:$true] %s54_s12  ;;  %s22_s14 = int_to_ptr.vmem [resolvable:$true] %s21_s14 }
  0x16   :  { %s705_s17 = scalar_lea.hbm %s1000_s3, 1024 }
  0x17   :  { %p706_p8 = scmp.ne.s32.totalorder %s1000_s3, %s705_s17  ;;  %p709_p9 = scmp.lt.u32.totalorder %s705_s17, %s1000_s3 }
  0x19   :  { %p711_p10 = pnand %p709_p9, %p706_p8 }
  0x1b   :  { %714 = shalt.err (!%p711_p10)
}
  0x1c   :  { %s715_s1 = scalar_lea.vmem %s55_s12, 1024  ;;  %p720_p12 = scmp.lt.s32.totalorder %s55_s12, %s55_s12 }
  0x1d   :  { %p716_p11 = scmp.ne.s32.totalorder %s55_s12, %s715_s1  ;;  %p721_p13 = scmp.lt.s32.totalorder %s715_s1, %s715_s1 }
  0x1f   :  { %p722_p0 = por %p721_p13, %p720_p12 }
  0x21   :  { %p723_p1 = pnand %p722_p0, %p716_p11 }
  0x23   :  { %726 = shalt.err (!%p723_p1)
}
  0x24   :  { %60 = dma.hbm_to_vmem [thread:$0]  %s1000_s3, 1024, %s55_s12, [#allocation9], %s824_s7, %s824_s7, %s825_s8  }
  0x25   :  { %s727_s26 = scalar_lea.hbm %s997_s0, 128 }
  0x26   :  { %p728_p2 = scmp.ne.s32.totalorder %s997_s0, %s727_s26  ;;  %p731_p3 = scmp.lt.u32.totalorder %s727_s26, %s997_s0 }
  0x28   :  { %p733_p4 = pnand %p731_p3, %p728_p2 }
  0x2a   :  { %736 = shalt.err (!%p733_p4)
}
  0x2b   :  { %s737_s9 = scalar_lea.vmem %s22_s14, 128  ;;  %p742_p6 = scmp.lt.s32.totalorder %s22_s14, %s22_s14 }
  0x2c   :  { %p738_p5 = scmp.ne.s32.totalorder %s22_s14, %s737_s9  ;;  %p743_p7 = scmp.lt.s32.totalorder %s737_s9, %s737_s9 }
  0x2e   :  { %p744_p8 = por %p743_p7, %p742_p6 }
  0x30   :  { %p745_p9 = pnand %p744_p8, %p738_p5 }
  0x32   :  { %748 = shalt.err (!%p745_p9)
}
  0x33   :  { %24 = dma.hbm_to_vmem [thread:$0]  %s997_s0, 128, %s22_s14, [#allocation3]  }
  0x34   :  { %s828_s11 = smov [#allocation7]   ;;  %s829_s13 = smov [#allocation10]  }
  0x35   :  { %s42_s12 = sshll.u32 %s828_s11, 4  ;;  %s66_s15 = sshll.u32 %s829_s13, 4  ;;  %s43_s12 = int_to_ptr.vmem [resolvable:$true] %s42_s12  ;;  %s67_s15 = int_to_ptr.vmem [resolvable:$true] %s66_s15 }
  0x36   :  { %s749_s18 = scalar_lea.hbm %s999_s2, 1024 }
  0x37   :  { %p750_p10 = scmp.ne.s32.totalorder %s999_s2, %s749_s18  ;;  %p753_p11 = scmp.lt.u32.totalorder %s749_s18, %s999_s2 }
  0x39   :  { %p755_p12 = pnand %p753_p11, %p750_p10 }
  0x3b   :  { %758 = shalt.err (!%p755_p12)
}
  0x3c   :  { %s759_s0 = scalar_lea.vmem %s43_s12, 1024  ;;  %p764_p0 = scmp.lt.s32.totalorder %s43_s12, %s43_s12 }
  0x3d   :  { %p760_p13 = scmp.ne.s32.totalorder %s43_s12, %s759_s0  ;;  %p765_p1 = scmp.lt.s32.totalorder %s759_s0, %s759_s0 }
  0x3f   :  { %p766_p2 = por %p765_p1, %p764_p0 }
  0x41   :  { %p767_p3 = pnand %p766_p2, %p760_p13 }
  0x43   :  { %770 = shalt.err (!%p767_p3)
}
  0x44   :  { %48 = dma.hbm_to_vmem [thread:$0]  %s999_s2, 1024, %s43_s12, [#allocation6], %s824_s7, %s824_s7, %s825_s8  }
  0x45   :  { %s771_s25 = scalar_lea.hbm %s1001_s4, 1024 }
  0x46   :  { %p772_p4 = scmp.ne.s32.totalorder %s1001_s4, %s771_s25  ;;  %p775_p5 = scmp.lt.u32.totalorder %s771_s25, %s1001_s4 }
  0x48   :  { %p777_p6 = pnand %p775_p5, %p772_p4 }
  0x4a   :  { %780 = shalt.err (!%p777_p6)
}
  0x4b   :  { %s781_s30 = scalar_lea.vmem %s67_s15, 1024  ;;  %p786_p8 = scmp.lt.s32.totalorder %s67_s15, %s67_s15 }
  0x4c   :  { %p782_p7 = scmp.ne.s32.totalorder %s67_s15, %s781_s30  ;;  %p787_p9 = scmp.lt.s32.totalorder %s781_s30, %s781_s30 }
  0x4e   :  { %p788_p10 = por %p787_p9, %p786_p8 }
  0x50   :  { %p789_p11 = pnand %p788_p10, %p782_p7 }
  0x52   :  { %792 = shalt.err (!%p789_p11)
}
  0x53   :  { %72 = dma.hbm_to_vmem [thread:$0]  %s1001_s4, 1024, %s67_s15, [#allocation9], %s824_s7, %s824_s7, %s825_s8  }
  0x54   :  { %815 = dma.done.wait [#allocation3], 128  }
  0x55   :  { %816 = vsyncadd [#allocation3], 4294967168 }
  0x56   :  { %817 = dma.done.wait [#allocation6], 1152  }
  0x57   :  { %818 = vsyncadd [#allocation6], 4294966144 }
  0x58   :  { %819 = dma.done.wait [#allocation9], 2048  }
  0x59   :  { %820 = vsyncadd [#allocation9], 4294965248  ;;  %v830_v0 = vmov 0.0   ;;  %vm831_vm0 = vmmov 0   ;;  %v648_v1 = vld [vmem:[#allocation5] sm:$0xff]   ;;  %v95_v2 = vld [vmem:[#allocation2] sm:$0xff] }
  0x5a   :  { %572 = vmatprep.subr.bf16.mxu0 %v830_v0  ;;  %574 = vmatprep.mubr.msk.bf16.mxu0 %vm831_vm0, %v830_v0  ;;  %v96_v3 = vpack.c.bf16 %v95_v2, %v95_v2  ;;  %vm109_vm1 = vcmask 130048   ;;  %v649_v4 = vld [vmem:[#allocation7] sm:$0xff]   ;;  %v650_v5 = vld [vmem:[#allocation7 + $0x8] sm:$0xff]   ;;  %v651_v6 = vld [vmem:[#allocation7 + $0x10] sm:$0xff]   ;;  %s832_s15 = smov [#allocation11]  }
  0x5b   :  { %578 = vmatprep.subr.bf16.mxu1 %v830_v0  ;;  %594 = vmatprep.mubr.msk.bf16.mxu1 %vm831_vm0, %v830_v0  ;;  %v652_v7 = vld [vmem:[#allocation7 + $0x18] sm:$0xff]   ;;  %v653_v8 = vld [vmem:[#allocation7 + $0x20] sm:$0xff]   ;;  %v654_v9 = vld [vmem:[#allocation7 + $0x28] sm:$0xff]   ;;  %s502_s16 = sshll.u32 %s832_s15, 4  ;;  %s503_s16 = int_to_ptr.vmem [resolvable:$true] %s502_s16 }
  0x5c   :  { %573 = vmatpush3.bf16.msra.mxu0 %v648_v1  ;;  %579 = vmatpush3.bf16.msra.mxu1 %v649_v4  ;;  %v655_v10 = vld [vmem:[#allocation7 + $0x30] sm:$0xff]   ;;  %v656_v11 = vld [vmem:[#allocation7 + $0x38] sm:$0xff]   ;;  %v657_v12 = vld [vmem:[#allocation8] sm:$0xff]   ;;  %p798_p13 = scmp.lt.s32.totalorder %s503_s16, %s503_s16 }
  0x5d   :  { %598 = vmatprep.subr.bf16.mxu0 %v830_v0  ;;  %580 = vmatprep.subr.bf16.mxu1 %v830_v0  ;;  %v658_v13 = vld [vmem:[#allocation8 + $0x8] sm:$0xff]   ;;  %v659_v14 = vld [vmem:[#allocation8 + $0x10] sm:$0xff]   ;;  %v660_v15 = vld [vmem:[#allocation8 + $0x18] sm:$0xff]  }
  0x5e   :  { %v513_v16 = vld [vmem:[%s1002_s5] ss:$0 sm:$0xff]  ;;  %v661_v24 = vld [vmem:[#allocation8 + $0x20] sm:$0xff]   ;;  %v662_v25 = vld [vmem:[#allocation8 + $0x28] sm:$0xff]  }
  0x5f   :  { %575 = vmatmul.mubr.msk.bf16.vlgmr.msra.gmra.mrb[0].mxu0 %vm109_vm1, %v96_v3  ;;  %v663_v26 = vld [vmem:[#allocation8 + $0x30] sm:$0xff]   ;;  %v664_v27 = vld [vmem:[#allocation8 + $0x38] sm:$0xff]   ;;  %v665_v28 = vld [vmem:[#allocation10] sm:$0xff]  }
  0x60   :  { %614 = vmatprep.mubr.msk.bf16.mxu0 %vm831_vm0, %v830_v0  ;;  %581 = vmatpush3.bf16.msra.mxu1 %v650_v5  ;;  %v666_v29 = vld [vmem:[#allocation10 + $0x8] sm:$0xff]   ;;  %v667_v30 = vld [vmem:[#allocation10 + $0x10] sm:$0xff]   ;;  %v668_v31 = vld [vmem:[#allocation10 + $0x18] sm:$0xff]  }
  0x61   :  { %582 = vmatprep.subr.bf16.mxu1 %v830_v0  ;;  %599 = vmatpush3.bf16.msra.mxu0 %v657_v12  ;;  %v516_v32 = vld [vmem:[%s1002_s5 + $0x1] ss:$0 sm:$0xff]  ;;  %v669_v40 = vld [vmem:[#allocation10 + $0x20] sm:$0xff]   ;;  %v670_v41 = vld [vmem:[#allocation10 + $0x28] sm:$0xff]  }
  0x62   :  { %600 = vmatprep.subr.bf16.mxu0 %v830_v0  ;;  %v671_v42 = vld [vmem:[#allocation10 + $0x30] sm:$0xff]   ;;  %v672_v43 = vld [vmem:[#allocation10 + $0x38] sm:$0xff]  }
  0x63   :  { %v525_v44 = vld [vmem:[%s1002_s5 + $0x2] ss:$0 sm:$0xff]  ;;  %v534_v52 = vld [vmem:[%s1002_s5 + $0x3] ss:$0 sm:$0xff]  ;;  %s793_s5 = scalar_lea.vmem %s503_s16, 128 }
  0x64   :  { %583 = vmatpush3.bf16.msra.mxu1 %v651_v6  ;;  %p794_p12 = scmp.ne.s32.totalorder %s503_s16, %s793_s5  ;;  %p799_p0 = scmp.lt.s32.totalorder %s793_s5, %s793_s5 }
  0x65   :  { %584 = vmatprep.subr.bf16.mxu1 %v830_v0  ;;  %601 = vmatpush3.bf16.msra.mxu0 %v658_v13 }
  0x66   :  { %602 = vmatprep.subr.bf16.mxu0 %v830_v0  ;;  %p800_p1 = por %p799_p0, %p798_p13 }
  0x68   :  { %585 = vmatpush3.bf16.msra.mxu1 %v652_v7  ;;  %p801_p2 = pnand %p800_p1, %p794_p12 }
  0x69   :  { %586 = vmatprep.subr.bf16.mxu1 %v830_v0  ;;  %603 = vmatpush3.bf16.msra.mxu0 %v659_v14 }
  0x6a   :  { %604 = vmatprep.subr.bf16.mxu0 %v830_v0 }
  0x6c   :  { %587 = vmatpush3.bf16.msra.mxu1 %v653_v8 }
  0x6d   :  { %588 = vmatprep.subr.bf16.mxu1 %v830_v0  ;;  %605 = vmatpush3.bf16.msra.mxu0 %v660_v15 }
  0x6e   :  { %606 = vmatprep.subr.bf16.mxu0 %v830_v0 }
  0x70   :  { %589 = vmatpush3.bf16.msra.mxu1 %v654_v9 }
  0x71   :  { %590 = vmatprep.subr.bf16.mxu1 %v830_v0  ;;  %607 = vmatpush3.bf16.msra.mxu0 %v661_v24 }
  0x72   :  { %608 = vmatprep.subr.bf16.mxu0 %v830_v0 }
  0x74   :  { %591 = vmatpush3.bf16.msra.mxu1 %v655_v10 }
  0x75   :  { %592 = vmatprep.subr.bf16.mxu1 %v830_v0  ;;  %609 = vmatpush3.bf16.msra.mxu0 %v662_v25 }
  0x76   :  { %610 = vmatprep.subr.bf16.mxu0 %v830_v0 }
  0x78   :  { %593 = vmatpush3.bf16.msra.mxu1 %v656_v11 }
  0x79   :  { %618 = vmatprep.subr.bf16.mxu1 %v830_v0  ;;  %611 = vmatpush3.bf16.msra.mxu0 %v663_v26 }
  0x7a   :  { %612 = vmatprep.subr.bf16.mxu0 %v830_v0 }
  0x7d   :  { %613 = vmatpush3.bf16.msra.mxu0 %v664_v27 }
 0x132   :  { %v147_v17 = vpop.f32.mrb[0].mxu0 }
 0x133   :  { %v148_v18 = vadd.f32 %v513_v16, %v147_v17  ;;  %v576_v19 = vpop.f32.mrb[1].mxu0 }
 0x134   :  { %v150_v20 = vpop.f32.mrb[2].mxu0 }
 0x135   :  { %673 = vtanh.f32 %v148_v18  ;;  %v577_v21 = vpop.f32.mrb[3].mxu0 }
 0x13f   :  { %v674_v22 = vpop.eup %673 }
 0x140   :  { %v154_v23 = vpack.c.bf16 %v674_v22, %v674_v22 }
 0x142   :  { %595 = vmatmul.mubr.bf16.vlgmr.msra.gmra.mrb[0].mxu1 %v154_v23 }
 0x143   :  { %634 = vmatprep.mubr.msk.bf16.mxu1 %vm831_vm0, %v830_v0  ;;  %619 = vmatpush3.bf16.msra.mxu1 %v665_v28 }
 0x144   :  { %620 = vmatprep.subr.bf16.mxu1 %v830_v0 }
 0x147   :  { %621 = vmatpush3.bf16.msra.mxu1 %v666_v29 }
 0x148   :  { %622 = vmatprep.subr.bf16.mxu1 %v830_v0 }
 0x14b   :  { %623 = vmatpush3.bf16.msra.mxu1 %v667_v30 }
 0x14c   :  { %624 = vmatprep.subr.bf16.mxu1 %v830_v0 }
 0x14f   :  { %625 = vmatpush3.bf16.msra.mxu1 %v668_v31 }
 0x150   :  { %626 = vmatprep.subr.bf16.mxu1 %v830_v0 }
 0x153   :  { %627 = vmatpush3.bf16.msra.mxu1 %v669_v40 }
 0x154   :  { %628 = vmatprep.subr.bf16.mxu1 %v830_v0 }
 0x157   :  { %629 = vmatpush3.bf16.msra.mxu1 %v670_v41 }
 0x158   :  { %630 = vmatprep.subr.bf16.mxu1 %v830_v0 }
 0x15b   :  { %631 = vmatpush3.bf16.msra.mxu1 %v671_v42 }
 0x15c   :  { %632 = vmatprep.subr.bf16.mxu1 %v830_v0 }
 0x15f   :  { %633 = vmatpush3.bf16.msra.mxu1 %v672_v43 }
 0x215   :  { %v257_v33 = vpop.f32.mrb[0].mxu1 }
 0x216   :  { %v258_v34 = vadd.f32 %v516_v32, %v257_v33  ;;  %v596_v35 = vpop.f32.mrb[1].mxu1 }
 0x217   :  { %v260_v36 = vpop.f32.mrb[2].mxu1 }
 0x218   :  { %675 = vtanh.f32 %v258_v34  ;;  %v597_v37 = vpop.f32.mrb[3].mxu1 }
 0x222   :  { %v676_v38 = vpop.eup %675 }
 0x223   :  { %v264_v39 = vpack.c.bf16 %v676_v38, %v676_v38 }
 0x225   :  { %615 = vmatmul.mubr.bf16.vlgmr.msra.gmra.mrb[4].mxu0 %v264_v39 }
 0x2f8   :  { %v367_v45 = vpop.f32.mrb[4].mxu0 }
 0x2f9   :  { %v368_v46 = vadd.f32 %v525_v44, %v367_v45  ;;  %v616_v47 = vpop.f32.mrb[5].mxu0 }
 0x2fa   :  { %v370_v48 = vpop.f32.mrb[6].mxu0 }
 0x2fb   :  { %677 = vtanh.f32 %v368_v46  ;;  %v617_v49 = vpop.f32.mrb[7].mxu0 }
 0x305   :  { %v678_v50 = vpop.eup %677 }
 0x306   :  { %v374_v51 = vpack.c.bf16 %v678_v50, %v678_v50 }
 0x308   :  { %635 = vmatmul.mubr.bf16.vlgmr.msra.gmra.mrb[4].mxu1 %v374_v51 }
 0x3db   :  { %v477_v53 = vpop.f32.mrb[4].mxu1 }
 0x3dc   :  { %v478_v54 = vadd.f32 %v534_v52, %v477_v53  ;;  %v636_v55 = vpop.f32.mrb[5].mxu1 }
 0x3dd   :  { %v480_v56 = vpop.f32.mrb[6].mxu1 }
 0x3de   :  { %483 = vmax.xlane.f32.xlu0 %v478_v54  ;;  %v637_v57 = vpop.f32.mrb[7].mxu1 }
 0x46b   :  { %v484_v58 = vpop.xlane.xlu0 %483 }
 0x46c   :  { %v485_v59 = vsub.f32 %v478_v54, %v484_v58 }
 0x46e   :  { %v486_v60 = vmul.f32 1.442695, %v485_v59 }
 0x470   :  { %679 = vpow2.f32 %v486_v60 }
 0x47a   :  { %v680_v61 = vpop.eup %679 }
 0x47b   :  { %488 = vadd.xlane.f32.xlu0 %v680_v61 }
 0x508   :  { %v489_v62 = vpop.xlane.xlu0 %488 }
 0x509   :  { %681 = vrcp.f32 %v489_v62 }
 0x513   :  { %v682_v63 = vpop.eup %681 }
 0x514   :  { %v491_v0 = vmul.f32 %v682_v63, %v489_v62 }
 0x516   :  { %v492_v1 = vsub.f32 2.0, %v491_v0 }
 0x518   :  { %v493_v2 = vmul.f32 %v682_v63, %v492_v1 }
 0x51a   :  { %v494_v3 = vmul.f32 %v680_v61, %v493_v2 }
 0x51c   :  { %495 = vst [vmem:[#allocation11] sm:$0xff] %v494_v3 }
 0x51d   :  { %804 = shalt.err (!%p801_p2)
}
 0x51e   :  { %s805_s19 = scalar_lea.hbm %s1003_s6, 128 }
 0x51f   :  { %p806_p3 = scmp.ne.s32.totalorder %s1003_s6, %s805_s19  ;;  %p809_p4 = scmp.lt.u32.totalorder %s805_s19, %s1003_s6 }
 0x521   :  { %p811_p5 = pnand %p809_p4, %p806_p3 }
 0x523   :  { %814 = shalt.err (!%p811_p5)
}
 0x524   :  { %505 = dma.vmem_to_hbm [thread:$0]  %s503_s16, 128, %s1003_s6, [#allocation4]  }
 0x525   :  { %821 = dma.done.wait [#allocation4], 128  }
 0x526   :  { %822 = vsyncadd [#allocation4], 4294967168 }
 0x527   :  { %509 = vsyncpa [#allocation3], 1 }
 0x528   :  { %510 = vsyncpa [#allocation6], 1 }
 0x529   :  { %511 = vsyncpa [#allocation9], 1 }
 0x52a   :  { %512 = vsyncpa [#allocation4], 1 }

</bundles_post_ra>
